<compile_context>
chip_gen: v5e
topology: v5e:2x2
jax: 0.10.0
libtpu: 0.0.40
codegen_flags: <defaults>
</compile_context>

<pallas_src>
import functools

import jax
import jax.numpy as jnp
import numpy as np
from jax.experimental import pallas as pl
from jax.experimental.pallas import tpu as pltpu


def _round_up(x, m):
    return ((x + m - 1) // m) * m


def _tpu_generation():
    """Best-effort TPU generation (5 for v5e, 6 for v6e, 7 for v7x, 0 if unknown)."""
    try:
        kind = jax.devices()[0].device_kind.lower()
    except Exception:
        return 0
    for g in range(9, 1, -1):
        if f"v{g}" in kind:
            return g
    return 0


# --------------------------------- kernel ------------------------------------

def value_mlp_kernel(x_ref, w1_ref, b1_ref, w2_ref, b2_ref, w3_ref, b3_ref, o_ref,
                     *, act_dtype):
    """One batch tile of the fused 3-layer value MLP.

    x_ref : (TM, Dp)      float32   batch tile of states (zero-padded features)
    w*_ref: (in_p, out_p) bfloat16  zero-padded, lane-aligned, VMEM-resident
    b*_ref: (1, out_p)    float32
    o_ref : (TM, 1)       float32
    act_dtype: bf16 on v6e/v7x (bf16 EUP/VPU), f32 on v5e.
    """
    x = x_ref[...].astype(jnp.bfloat16)                                   # bf16 MXU path

    h1 = jnp.dot(x, w1_ref[...], preferred_element_type=jnp.float32)      # f32 accumulate
    h1 = jnp.tanh((h1 + b1_ref[...]).astype(act_dtype))                   # bias in f32, tanh in act_dtype

    h2 = jnp.dot(h1.astype(jnp.bfloat16), w2_ref[...],
                 preferred_element_type=jnp.float32)
    h2 = jnp.tanh((h2 + b2_ref[...]).astype(act_dtype))

    out = jnp.dot(h2.astype(jnp.bfloat16), w3_ref[...],
                  preferred_element_type=jnp.float32)                     # (TM, 1)
    o_ref[...] = (out + b3_ref[...]).astype(o_ref.dtype)


# --------------------------------- wrapper ------------------------------------

def _choose_tile_m(batch, tile_m_max=1024):
    """Batch tile: small batches -> single 16-aligned tile; large batches -> >=2
    grid steps (both v7x TensorCores busy) with minimal padding waste."""
    if batch <= 128:
        return max(16, _round_up(batch, 16))
    half = _round_up((batch + 1) // 2, 16)
    return min(tile_m_max, half)


def value_forward(state, kparams, *, act_dtype=jnp.float32, tile_m_max=1024):
    """state: (B, num_inputs) float32 -> (B, 1) float32."""
    (w1, b1), (w2, b2), (w3, b3) = kparams
    B, D = state.shape
    d_pad = w1.shape[0]
    assert D <= d_pad

    tm = _choose_tile_m(B, tile_m_max)
    b_pad = _round_up(B, tm)
    if b_pad != B or d_pad != D:
        state = jnp.pad(state, ((0, b_pad - B), (0, d_pad - D)))

    grid = (b_pad // tm,)

    def resident(arr):
        # Same block every grid step -> stays VMEM-resident (no re-DMA).
        shape = arr.shape
        return pl.BlockSpec(shape, lambda i: (0,) * len(shape))

    kernel = functools.partial(value_mlp_kernel, act_dtype=act_dtype)

    out = pl.pallas_call(
        kernel,
        out_shape=jax.ShapeDtypeStruct((b_pad, 1), jnp.float32),
        grid_spec=pltpu.PrefetchScalarGridSpec(
            num_scalar_prefetch=0,
            grid=grid,
            in_specs=[
                pl.BlockSpec((tm, d_pad), lambda i: (i, 0)),   # state: tiled over batch
                resident(w1), resident(b1),
                resident(w2), resident(b2),
                resident(w3), resident(b3),
            ],
            out_specs=pl.BlockSpec((tm, 1), lambda i: (i, 0)),
        ),
        compiler_params=pltpu.CompilerParams(
            dimension_semantics=("parallel",),             # shard batch across TCs (v7x)
            vmem_limit_bytes=32 * 1024 * 1024,             # well under v7x's 64 MiB VMEM
        ),
    )(state, w1, b1, w2, b2, w3, b3)

    return out[:B]


# ----------------------------- parameter handling -----------------------------

def init_linear(key, fan_in, fan_out):
    """Mirror torch.nn.Linear default init (U[-1/sqrt(fan_in), +1/sqrt(fan_in)]).

    Weight returned as (fan_in, fan_out) so the kernel computes x @ W + b."""
    kw, kb = jax.random.split(key)
    bound = 1.0 / np.sqrt(fan_in)
    w = jax.random.uniform(kw, (fan_in, fan_out), jnp.float32, -bound, bound)
    b = jax.random.uniform(kb, (1, fan_out), jnp.float32, -bound, bound)
    return w, b


def make_value_params(key, num_inputs, hidden_sizes=(400, 300)):
    sizes = [num_inputs] + list(hidden_sizes) + [1]
    keys = jax.random.split(key, len(sizes) - 1)
    return [init_linear(k, sizes[j], sizes[j + 1]) for j, k in enumerate(keys)]


def prepare_kernel_params(params, *, hidden_pad=128, input_pad=128,
                          weight_dtype=jnp.bfloat16):
    """Zero-pad widths (input dim to `input_pad`, hidden dims to `hidden_pad`
    multiples) and cast weights to bf16.  Exact w.r.t. the unpadded network:
    padded units get zero weights and zero bias, so tanh(0)=0 contributes
    nothing downstream.  The final output width (1) is left unpadded; biases
    stay f32 (added in f32 in the kernel)."""
    prepared = []
    n_layers = len(params)
    for j, (w, b) in enumerate(params):
        fan_in, fan_out = w.shape
        in_pad = _round_up(fan_in, input_pad) if j == 0 else prepared[-1][0].shape[1]
        out_pad = fan_out if j == n_layers - 1 else _round_up(fan_out, hidden_pad)
        wp = jnp.zeros((in_pad, out_pad), jnp.float32).at[:fan_in, :fan_out].set(w)
        bp = jnp.zeros((1, out_pad), jnp.float32).at[:, :fan_out].set(b)
        prepared.append((wp.astype(weight_dtype), bp))
    return prepared


# --------------------------------- references ---------------------------------

def mlp_ref(state, params):
    """Plain-JAX f32 reference: Linear->Tanh->Linear->Tanh->Linear."""
    (w1, b1), (w2, b2), (w3, b3) = params
    h1 = jnp.tanh(state @ w1 + b1)
    h2 = jnp.tanh(h1 @ w2 + b2)
    return h2 @ w3 + b3


def mlp_ref_kernel_dtypes(state, kparams, act_dtype):
    """Plain-JAX reference with the kernel's exact dtype schedule (tight check)."""
    (w1, b1), (w2, b2), (w3, b3) = kparams
    d_pad = w1.shape[0]
    x = jnp.pad(state, ((0, 0), (0, d_pad - state.shape[1]))).astype(jnp.bfloat16)
    h1 = jnp.dot(x, w1, preferred_element_type=jnp.float32) + b1
    h1 = jnp.tanh(h1.astype(act_dtype))
    h2 = jnp.dot(h1.astype(jnp.bfloat16), w2, preferred_element_type=jnp.float32) + b2
    h2 = jnp.tanh(h2.astype(act_dtype))
    return jnp.dot(h2.astype(jnp.bfloat16), w3, preferred_element_type=jnp.float32) + b3


def _check(state, params, kparams, act_dtype):
    out = jax.block_until_ready(value_forward(state, kparams, act_dtype=act_dtype))
    assert out.shape == (state.shape[0], 1) and out.dtype == jnp.float32

    # Tight check: same dtype schedule in plain JAX (isolates kernel correctness).
    ref_tight = mlp_ref_kernel_dtypes(state, kparams, act_dtype)
    np.testing.assert_allclose(np.asarray(out), np.asarray(ref_tight),
                               rtol=2e-2, atol=2e-2)

    # Semantic check vs. original f32 module parameters (bf16 rounding only).
    ref_f32 = mlp_ref(state, params)
    np.testing.assert_allclose(np.asarray(out), np.asarray(ref_f32),
                               rtol=5e-2, atol=5e-2)


if __name__ == "__main__":
    key = jax.random.PRNGKey(0)
    k_param, k_state1, k_state2 = jax.random.split(key, 3)

    num_inputs = 32
    hidden_sizes = (400, 300)   # module defaults

    gen = _tpu_generation()
    hidden_pad = 256 if gen >= 6 else 128            # 400->512, 300->512 on v6e/v7x; 300->384 on v5e
    act_dtype = jnp.bfloat16 if gen >= 6 else jnp.float32  # v5e has no bf16 VPU/EUP

    params = make_value_params(k_param, num_inputs, hidden_sizes)
    kparams = prepare_kernel_params(params, hidden_pad=hidden_pad, input_pad=128)

    # Small batch (single 16-row tile).
    state_small = jax.random.normal(k_state1, (8, num_inputs), jnp.float32)
    _check(state_small, params, kparams, act_dtype)

    # Larger batch exercising the tiled/pipelined grid (384 rows -> 2 tiles of 192).
    state_big = jax.random.normal(k_state2, (384, num_inputs), jnp.float32)
    _check(state_big, params, kparams, act_dtype)

    print("KERNEL_OK")
</pallas_src>

<mosaic_0001>
module attributes {stable_mosaic.version = 11 : i64} {
  func.func @value_mlp_kernel(%arg0: i32, %arg1: memref<16x128xf32, #tpu.memory_space<vmem>>, %arg2: memref<128x512xbf16, #tpu.memory_space<vmem>>, %arg3: memref<1x512xf32, #tpu.memory_space<vmem>>, %arg4: memref<512x384xbf16, #tpu.memory_space<vmem>>, %arg5: memref<1x384xf32, #tpu.memory_space<vmem>>, %arg6: memref<384x1xbf16, #tpu.memory_space<vmem>>, %arg7: memref<1x1xf32, #tpu.memory_space<vmem>>, %arg8: memref<16x1xf32, #tpu.memory_space<vmem>>) attributes {dimension_semantics = [#tpu.dimension_semantics<parallel>], iteration_bounds = array<i64: 1>, scalar_prefetch = 0 : i64, scratch_operands = 0 : i64, tpu.core_type = #tpu.core_type<tc>, window_params = [{transform_indices = @transform_0, window_bounds = array<i64: 16, 128>}, {pipeline_mode = #tpu.pipeline_mode<synchronous>, transform_indices = @transform_1, window_bounds = array<i64: 128, 512>}, {pipeline_mode = #tpu.pipeline_mode<synchronous>, transform_indices = @transform_2, window_bounds = array<i64: 1, 512>}, {pipeline_mode = #tpu.pipeline_mode<synchronous>, transform_indices = @transform_3, window_bounds = array<i64: 512, 384>}, {pipeline_mode = #tpu.pipeline_mode<synchronous>, transform_indices = @transform_4, window_bounds = array<i64: 1, 384>}, {pipeline_mode = #tpu.pipeline_mode<synchronous>, transform_indices = @transform_5, window_bounds = array<i64: 384, 1>}, {pipeline_mode = #tpu.pipeline_mode<synchronous>, transform_indices = @transform_6, window_bounds = array<i64: 1, 1>}, {transform_indices = @transform_7, window_bounds = array<i64: 16, 1>}]} {
    %c0 = arith.constant 0 : index
    %c0_0 = arith.constant 0 : index
    %0 = vector.load %arg1[%c0, %c0_0] : memref<16x128xf32, #tpu.memory_space<vmem>>, vector<16x128xf32>
    %1 = arith.truncf %0 : vector<16x128xf32> to vector<16x128xbf16>
    %c0_1 = arith.constant 0 : index
    %c0_2 = arith.constant 0 : index
    %2 = vector.load %arg2[%c0_1, %c0_2] : memref<128x512xbf16, #tpu.memory_space<vmem>>, vector<128x512xbf16>
    %cst = arith.constant dense<0.000000e+00> : vector<16x512xf32>
    %3 = tpu.matmul %1, %2, %cst {dimension_numbers = #tpu.dot_dimension_numbers<[1], [0], [0], [1], [0, 0, 1, 1], [], []>} : vector<16x128xbf16>, vector<128x512xbf16>, vector<16x512xf32> -> vector<16x512xf32>
    %c0_3 = arith.constant 0 : index
    %c0_4 = arith.constant 0 : index
    %4 = vector.load %arg3[%c0_3, %c0_4] : memref<1x512xf32, #tpu.memory_space<vmem>>, vector<1x512xf32>
    %5 = vector.broadcast %4 : vector<1x512xf32> to vector<16x512xf32>
    %6 = arith.addf %3, %5 : vector<16x512xf32>
    %7 = math.tanh %6 : vector<16x512xf32>
    %8 = arith.truncf %7 : vector<16x512xf32> to vector<16x512xbf16>
    %c0_5 = arith.constant 0 : index
    %c0_6 = arith.constant 0 : index
    %9 = vector.load %arg4[%c0_5, %c0_6] : memref<512x384xbf16, #tpu.memory_space<vmem>>, vector<512x384xbf16>
    %cst_7 = arith.constant dense<0.000000e+00> : vector<16x384xf32>
    %10 = tpu.matmul %8, %9, %cst_7 {dimension_numbers = #tpu.dot_dimension_numbers<[1], [0], [0], [1], [0, 0, 1, 1], [], []>} : vector<16x512xbf16>, vector<512x384xbf16>, vector<16x384xf32> -> vector<16x384xf32>
    %c0_8 = arith.constant 0 : index
    %c0_9 = arith.constant 0 : index
    %11 = vector.load %arg5[%c0_8, %c0_9] : memref<1x384xf32, #tpu.memory_space<vmem>>, vector<1x384xf32>
    %12 = vector.broadcast %11 : vector<1x384xf32> to vector<16x384xf32>
    %13 = arith.addf %10, %12 : vector<16x384xf32>
    %14 = math.tanh %13 : vector<16x384xf32>
    %15 = arith.truncf %14 : vector<16x384xf32> to vector<16x384xbf16>
    %c0_10 = arith.constant 0 : index
    %c0_11 = arith.constant 0 : index
    %16 = vector.load %arg6[%c0_10, %c0_11] : memref<384x1xbf16, #tpu.memory_space<vmem>>, vector<384x1xbf16>
    %cst_12 = arith.constant dense<0.000000e+00> : vector<16x1xf32>
    %17 = tpu.matmul %15, %16, %cst_12 {dimension_numbers = #tpu.dot_dimension_numbers<[1], [0], [0], [1], [0, 0, 1, 1], [], []>} : vector<16x384xbf16>, vector<384x1xbf16>, vector<16x1xf32> -> vector<16x1xf32>
    %c0_13 = arith.constant 0 : index
    %c0_14 = arith.constant 0 : index
    %18 = vector.load %arg7[%c0_13, %c0_14] : memref<1x1xf32, #tpu.memory_space<vmem>>, vector<1x1xf32>
    %19 = vector.broadcast %18 : vector<1x1xf32> to vector<16x1xf32>
    %20 = arith.addf %17, %19 : vector<16x1xf32>
    %c0_15 = arith.constant 0 : index
    %c0_16 = arith.constant 0 : index
    %21 = vector.load %arg8[%c0_15, %c0_16] : memref<16x1xf32, #tpu.memory_space<vmem>>, vector<16x1xf32>
    tpu.vector_store %arg8[%c0_15, %c0_16], %20 {strides = array<i32>} : memref<16x1xf32, #tpu.memory_space<vmem>>, vector<16x1xf32>,
    return
  }
  func.func @transform_0(%arg0: i32) -> (i32, i32) {
    %c0_i32 = arith.constant 0 : i32
    %c0_i32_0 = arith.constant 0 : i32
    return %arg0, %c0_i32 : i32, i32
  }
  func.func @transform_1(%arg0: i32) -> (i32, i32) {
    %c0_i32 = arith.constant 0 : i32
    %c0_i32_0 = arith.constant 0 : i32
    %c0_i32_1 = arith.constant 0 : i32
    return %c0_i32, %c0_i32_0 : i32, i32
  }
  func.func @transform_2(%arg0: i32) -> (i32, i32) {
    %c0_i32 = arith.constant 0 : i32
    %c0_i32_0 = arith.constant 0 : i32
    %c0_i32_1 = arith.constant 0 : i32
    return %c0_i32, %c0_i32_0 : i32, i32
  }
  func.func @transform_3(%arg0: i32) -> (i32, i32) {
    %c0_i32 = arith.constant 0 : i32
    %c0_i32_0 = arith.constant 0 : i32
    %c0_i32_1 = arith.constant 0 : i32
    return %c0_i32, %c0_i32_0 : i32, i32
  }
  func.func @transform_4(%arg0: i32) -> (i32, i32) {
    %c0_i32 = arith.constant 0 : i32
    %c0_i32_0 = arith.constant 0 : i32
    %c0_i32_1 = arith.constant 0 : i32
    return %c0_i32, %c0_i32_0 : i32, i32
  }
  func.func @transform_5(%arg0: i32) -> (i32, i32) {
    %c0_i32 = arith.constant 0 : i32
    %c0_i32_0 = arith.constant 0 : i32
    %c0_i32_1 = arith.constant 0 : i32
    return %c0_i32, %c0_i32_0 : i32, i32
  }
  func.func @transform_6(%arg0: i32) -> (i32, i32) {
    %c0_i32 = arith.constant 0 : i32
    %c0_i32_0 = arith.constant 0 : i32
    %c0_i32_1 = arith.constant 0 : i32
    return %c0_i32, %c0_i32_0 : i32, i32
  }
  func.func @transform_7(%arg0: i32) -> (i32, i32) {
    %c0_i32 = arith.constant 0 : i32
    %c0_i32_0 = arith.constant 0 : i32
    return %arg0, %c0_i32 : i32, i32
  }
}

</mosaic_0001>

<bundles_post_ra>
// kernel: tpu_custom_call.1
= control target key start
LH: loop header
LB: loop body
LE: loop exit
PB: predicated region body
PF: predicated region fallthrough
CT: control target
= control target key end

     0   :  { %s2422_s0 = inlined_call_operand.vmem [shape: f32[16,128], index: 0, kind: input, shape index: {}]   ;;  %s2423_s1 = inlined_call_operand.hbm [shape: bf16[128,512], index: 1, kind: input, shape index: {}]   ;;  %s2424_s2 = inlined_call_operand.vmem [shape: f32[1,512], index: 2, kind: input, shape index: {}]   ;;  %s2425_s3 = inlined_call_operand.hbm [shape: bf16[512,384], index: 3, kind: input, shape index: {}]   ;;  %s2426_s4 = inlined_call_operand.vmem [shape: f32[1,384], index: 4, kind: input, shape index: {}]   ;;  %s2427_s5 = inlined_call_operand.vmem [shape: bf16[384,1], index: 5, kind: input, shape index: {}]   ;;  %s2428_s6 = inlined_call_operand.<no memory space> [shape: f32[1,1], index: 6, kind: input, shape index: {}]   ;;  %s2429_s7 = inlined_call_operand.vmem [shape: f32[16,1], index: 7, kind: output, shape index: {}]  }
   0x1   :  { %v12_v0 = vstv %s2428_s6 }
   0x2   :  { %13 = vst [vmem:[#allocation2] sm:$0x1] %v12_v0 }
   0x3   :  { %14 = vsyncpa [#allocation4], 0  ;;  %s22_s28 = sshll.u32 %s2423_s1, 4  ;;  %s23_s28 = int_to_ptr.hbm [resolvable:$true] %s22_s28 }
   0x4   :  { %15 = vsyncpa [#allocation6], 0  ;;  %s2252_s29 = smov [#allocation3]   ;;  %s37_s10 = sshll.u32 %s2425_s3, 4  ;;  %s38_s10 = int_to_ptr.hbm [resolvable:$true] %s37_s10 }
   0x5   :  { %s24_s30 = sshll.u32 %s2252_s29, 4  ;;  %s2253_s11 = smov 256   ;;  %s25_s30 = int_to_ptr.vmem [resolvable:$true] %s24_s30 }
   0x6   :  { %s2254_s12 = smov 16   ;;  %s2255_s6 = smov [#allocation5]  }
   0x7   :  { %30 = dma.hbm_to_vmem [thread:$0]  %s23_s28, 4096, %s25_s30, [#allocation4], %s2253_s11, %s2253_s11, %s2254_s12  }
   0x8   :  { %s39_s13 = sshll.u32 %s2255_s6, 4  ;;  %s2256_s14 = smov 192   ;;  %s40_s13 = int_to_ptr.vmem [resolvable:$true] %s39_s13 }
   0x9   :  { %s2257_s15 = smov 12  }
   0xa   :  { %45 = dma.hbm_to_vmem [thread:$0]  %s38_s10, 12288, %s40_s13, [#allocation6], %s2256_s14, %s2256_s14, %s2257_s15  }
   0xb   :  { %2248 = dma.done.wait [#allocation4], 4096  }
   0xc   :  { %2249 = vsyncadd [#allocation4], 4294963200 }
   0xd   :  { %2250 = dma.done.wait [#allocation6], 12288  }
   0xe   :  { %2251 = vsyncadd [#allocation6], 4294955008  ;;  %v1519_v1 = vld [vmem:[#allocation3 + $0xe0] sm:$0xf]  ;;  %v2043_v2 = vld [vmem:[#allocation3 + $0xec] sm:$0xf0] }
   0xf   :  { %v2041_v3 = vld [vmem:[#allocation3 + $0xe4] sm:$0xf]  ;;  %v1520_v4 = vor.u32 %v2043_v2, %v1519_v1  ;;  %v1521_v5 = vld [vmem:[#allocation3 + $0xf0] sm:$0xf0]  ;;  %v1527_v6 = vld [vmem:[#allocation3 + $0xe8] sm:$0xf] }
  0x10   :  { %v2044_v7 = vld [vmem:[#allocation3 + $0xf4] sm:$0xf0]  ;;  %v1524_v8 = vor.u32 %v2041_v3, %v1521_v5  ;;  %v2042_v10 = vld [vmem:[#allocation3 + $0xec] sm:$0xf]  ;;  %v1529_v11 = vld [vmem:[#allocation3 + $0xf8] sm:$0xf0] }
  0x11   :  { %v1528_v9 = vor.u32 %v2044_v7, %v1527_v6  ;;  %v1503_v12 = vld [vmem:[#allocation3 + $0xc0] sm:$0xf]  ;;  %265 = vmatpush.bf16.msra.mxu0 %v1520_v4  ;;  %v1532_v13 = vor.u32 %v2042_v10, %v1529_v11  ;;  %v2039_v14 = vld [vmem:[#allocation3 + $0xcc] sm:$0xf0]  ;;  %v2037_v15 = vld [vmem:[#allocation3 + $0xc4] sm:$0xf] }
  0x12   :  { %v1505_v16 = vld [vmem:[#allocation3 + $0xd0] sm:$0xf0]  ;;  %279 = vmatpush.bf16.msra.mxu1 %v1524_v8  ;;  %v1504_v17 = vor.u32 %v2039_v14, %v1503_v12  ;;  %v1511_v19 = vld [vmem:[#allocation3 + $0xc8] sm:$0xf]  ;;  %v2040_v20 = vld [vmem:[#allocation3 + $0xd4] sm:$0xf0] }
  0x13   :  { %293 = vmatpush.bf16.msra.mxu2 %v1528_v9  ;;  %v1508_v18 = vor.u32 %v2037_v15, %v1505_v16  ;;  %v2038_v21 = vld [vmem:[#allocation3 + $0xcc] sm:$0xf]  ;;  %307 = vmatpush.bf16.msra.mxu3 %v1532_v13  ;;  %v1512_v22 = vor.u32 %v2040_v20, %v1511_v19  ;;  %v1513_v23 = vld [vmem:[#allocation3 + $0xd8] sm:$0xf0]  ;;  %v1487_v24 = vld [vmem:[#allocation3 + $0xa0] sm:$0xf] }
  0x14   :  { %v2035_v25 = vld [vmem:[#allocation3 + $0xac] sm:$0xf0]  ;;  %v1516_v26 = vor.u32 %v2038_v21, %v1513_v23  ;;  %v2033_v27 = vld [vmem:[#allocation3 + $0xa4] sm:$0xf]  ;;  %v1489_v28 = vld [vmem:[#allocation3 + $0xb0] sm:$0xf0] }
  0x15   :  { %v1495_v29 = vld [vmem:[#allocation3 + $0xa8] sm:$0xf]  ;;  %266 = vmatpush.bf16.msra.mxu0 %v1504_v17  ;;  %v1488_v30 = vor.u32 %v2035_v25, %v1487_v24  ;;  %v2036_v31 = vld [vmem:[#allocation3 + $0xb4] sm:$0xf0]  ;;  %v2034_v32 = vld [vmem:[#allocation3 + $0xac] sm:$0xf]  ;;  %v1492_v34 = vor.u32 %v2033_v27, %v1489_v28 }
  0x16   :  { %v1497_v33 = vld [vmem:[#allocation3 + $0xb8] sm:$0xf0]  ;;  %280 = vmatpush.bf16.msra.mxu1 %v1508_v18  ;;  %v1496_v35 = vor.u32 %v2036_v31, %v1495_v29  ;;  %v1471_v36 = vld [vmem:[#allocation3 + $0x80] sm:$0xf]  ;;  %v2031_v37 = vld [vmem:[#allocation3 + $0x8c] sm:$0xf0] }
  0x17   :  { %294 = vmatpush.bf16.msra.mxu2 %v1512_v22  ;;  %v2029_v38 = vld [vmem:[#allocation3 + $0x84] sm:$0xf]  ;;  %308 = vmatpush.bf16.msra.mxu3 %v1516_v26  ;;  %v1500_v39 = vor.u32 %v2034_v32, %v1497_v33  ;;  %v1473_v40 = vld [vmem:[#allocation3 + $0x90] sm:$0xf0]  ;;  %v1479_v41 = vld [vmem:[#allocation3 + $0x88] sm:$0xf]  ;;  %v1472_v45 = vor.u32 %v2031_v37, %v1471_v36 }
  0x18   :  { %v2032_v42 = vld [vmem:[#allocation3 + $0x94] sm:$0xf0]  ;;  %v2030_v43 = vld [vmem:[#allocation3 + $0x8c] sm:$0xf]  ;;  %v1481_v44 = vld [vmem:[#allocation3 + $0x98] sm:$0xf0]  ;;  %v1476_v46 = vor.u32 %v2029_v38, %v1473_v40 }
  0x19   :  { %267 = vmatpush.bf16.msra.mxu0 %v1488_v30  ;;  %v1480_v47 = vor.u32 %v2032_v42, %v1479_v41  ;;  %v1455_v48 = vld [vmem:[#allocation3 + $0x60] sm:$0xf]  ;;  %v2027_v49 = vld [vmem:[#allocation3 + $0x6c] sm:$0xf0]  ;;  %v2025_v50 = vld [vmem:[#allocation3 + $0x64] sm:$0xf]  ;;  %v1484_v51 = vor.u32 %v2030_v43, %v1481_v44 }
  0x1a   :  { %281 = vmatpush.bf16.msra.mxu1 %v1492_v34  ;;  %v1457_v52 = vld [vmem:[#allocation3 + $0x70] sm:$0xf0]  ;;  %v1463_v53 = vld [vmem:[#allocation3 + $0x68] sm:$0xf]  ;;  %v2028_v54 = vld [vmem:[#allocation3 + $0x74] sm:$0xf0]  ;;  %v1456_v57 = vor.u32 %v2027_v49, %v1455_v48 }
  0x1b   :  { %295 = vmatpush.bf16.msra.mxu2 %v1496_v35  ;;  %309 = vmatpush.bf16.msra.mxu3 %v1500_v39  ;;  %v2026_v55 = vld [vmem:[#allocation3 + $0x6c] sm:$0xf]  ;;  %v1465_v56 = vld [vmem:[#allocation3 + $0x78] sm:$0xf0]  ;;  %v1460_v58 = vor.u32 %v2025_v50, %v1457_v52  ;;  %v1464_v59 = vor.u32 %v2028_v54, %v1463_v53  ;;  %v1439_v60 = vld [vmem:[#allocation3 + $0x40] sm:$0xf] }
  0x1c   :  { %v2023_v61 = vld [vmem:[#allocation3 + $0x4c] sm:$0xf0]  ;;  %v2021_v62 = vld [vmem:[#allocation3 + $0x44] sm:$0xf]  ;;  %v1468_v63 = vor.u32 %v2026_v55, %v1465_v56  ;;  %v1441_v0 = vld [vmem:[#allocation3 + $0x50] sm:$0xf0] }
  0x1d   :  { %268 = vmatpush.bf16.msra.mxu0 %v1472_v45  ;;  %v1447_v1 = vld [vmem:[#allocation3 + $0x48] sm:$0xf]  ;;  %v2024_v2 = vld [vmem:[#allocation3 + $0x54] sm:$0xf0]  ;;  %v2022_v3 = vld [vmem:[#allocation3 + $0x4c] sm:$0xf]  ;;  %v1440_v5 = vor.u32 %v2023_v61, %v1439_v60  ;;  %v1444_v6 = vor.u32 %v2021_v62, %v1441_v0 }
  0x1e   :  { %282 = vmatpush.bf16.msra.mxu1 %v1476_v46  ;;  %v1449_v4 = vld [vmem:[#allocation3 + $0x58] sm:$0xf0]  ;;  %v1448_v7 = vor.u32 %v2024_v2, %v1447_v1  ;;  %v1423_v8 = vld [vmem:[#allocation3 + $0x20] sm:$0xf]  ;;  %v2019_v9 = vld [vmem:[#allocation3 + $0x2c] sm:$0xf0] }
  0x1f   :  { %296 = vmatpush.bf16.msra.mxu2 %v1480_v47  ;;  %310 = vmatpush.bf16.msra.mxu3 %v1484_v51  ;;  %v2017_v10 = vld [vmem:[#allocation3 + $0x24] sm:$0xf]  ;;  %v1452_v11 = vor.u32 %v2022_v3, %v1449_v4  ;;  %v1425_v12 = vld [vmem:[#allocation3 + $0x30] sm:$0xf0]  ;;  %v1431_v13 = vld [vmem:[#allocation3 + $0x28] sm:$0xf]  ;;  %v1424_v17 = vor.u32 %v2019_v9, %v1423_v8 }
  0x20   :  { %v2020_v14 = vld [vmem:[#allocation3 + $0x34] sm:$0xf0]  ;;  %v2018_v15 = vld [vmem:[#allocation3 + $0x2c] sm:$0xf]  ;;  %v1433_v16 = vld [vmem:[#allocation3 + $0x38] sm:$0xf0]  ;;  %v1428_v20 = vor.u32 %v2017_v10, %v1425_v12 }
  0x21   :  { %269 = vmatpush.bf16.msra.mxu0 %v1456_v57  ;;  %v1407_v18 = vld [vmem:[#allocation3] sm:$0xf]  ;;  %v2015_v19 = vld [vmem:[#allocation3 + $0xc] sm:$0xf0]  ;;  %v1432_v21 = vor.u32 %v2020_v14, %v1431_v13  ;;  %v2013_v22 = vld [vmem:[#allocation3 + $0x4] sm:$0xf]  ;;  %v1436_v25 = vor.u32 %v2018_v15, %v1433_v16 }
  0x22   :  { %283 = vmatpush.bf16.msra.mxu1 %v1460_v58  ;;  %v1409_v23 = vld [vmem:[#allocation3 + $0x10] sm:$0xf0]  ;;  %v1415_v24 = vld [vmem:[#allocation3 + $0x8] sm:$0xf]  ;;  %v2016_v26 = vld [vmem:[#allocation3 + $0x14] sm:$0xf0]  ;;  %v1408_v32 = vor.u32 %v2015_v19, %v1407_v18 }
  0x23   :  { %297 = vmatpush.bf16.msra.mxu2 %v1464_v59  ;;  %311 = vmatpush.bf16.msra.mxu3 %v1468_v63  ;;  %v2014_v27 = vld [vmem:[#allocation3 + $0xc] sm:$0xf]  ;;  %v1417_v28 = vld [vmem:[#allocation3 + $0x18] sm:$0xf0]  ;;  %v1619_v30 = vld [vmem:[#allocation5 + $0xa8] sm:$0xf]  ;;  %v1412_v36 = vor.u32 %v2013_v22, %v1409_v23  ;;  %v1416_v37 = vor.u32 %v2016_v26, %v1415_v24 }
  0x24   :  { %v60_v29 = vld [vmem:[%s2422_s0] sm:$0xff]  ;;  %v2067_v31 = vld [vmem:[#allocation5 + $0xb0] sm:$0xf0]  ;;  %v61_v33 = vld [vmem:[%s2422_s0 + $0x8] sm:$0xff]  ;;  %v1420_v38 = vor.u32 %v2014_v27, %v1417_v28  ;;  %vm1396_vm0 = vcmask 7168  }
  0x25   :  { %270 = vmatpush.bf16.msra.mxu0 %v1440_v5  ;;  %v1715_v34 = vld [vmem:[#allocation5 + $0x168] sm:$0xf]  ;;  %v2091_v35 = vld [vmem:[#allocation5 + $0x170] sm:$0xf0]  ;;  %v1620_v39 = vor.u32 %v2067_v31, %v1619_v30  ;;  %v1607_v40 = vld [vmem:[#allocation5 + $0x90] sm:$0xf]  ;;  %v62_v43 = vpack.c.bf16 %v61_v33, %v60_v29 }
  0x26   :  { %284 = vmatpush.bf16.msra.mxu1 %v1444_v6  ;;  %v1811_v41 = vld [vmem:[#allocation5 + $0x228] sm:$0xf]  ;;  %v2115_v42 = vld [vmem:[#allocation5 + $0x230] sm:$0xf0]  ;;  %v1716_v44 = vor.u32 %v2091_v35, %v1715_v34  ;;  %v2064_v45 = vld [vmem:[#allocation5 + $0x98] sm:$0xf0] }
  0x27   :  { %298 = vmatpush.bf16.msra.mxu2 %v1448_v7  ;;  %312 = vmatpush.bf16.msra.mxu3 %v1452_v11  ;;  %v1907_v46 = vld [vmem:[#allocation5 + $0x2e8] sm:$0xf]  ;;  %v2139_v47 = vld [vmem:[#allocation5 + $0x2f0] sm:$0xf0]  ;;  %v1703_v48 = vld [vmem:[#allocation5 + $0x150] sm:$0xf]  ;;  %v1812_v50 = vor.u32 %v2115_v42, %v1811_v41  ;;  %v1608_v51 = vor.u32 %v2064_v45, %v1607_v40 }
  0x28   :  { %v2088_v49 = vld [vmem:[#allocation5 + $0x158] sm:$0xf0]  ;;  %v1908_v52 = vor.u32 %v2139_v47, %v1907_v46  ;;  %v1595_v53 = vld [vmem:[#allocation5 + $0x78] sm:$0xf]  ;;  %v1799_v54 = vld [vmem:[#allocation5 + $0x210] sm:$0xf] }
  0x29   :  { %271 = vmatpush.bf16.msra.mxu0 %v1424_v17  ;;  %v2112_v55 = vld [vmem:[#allocation5 + $0x218] sm:$0xf0]  ;;  %v1704_v56 = vor.u32 %v2088_v49, %v1703_v48  ;;  %v2061_v57 = vld [vmem:[#allocation5 + $0x80] sm:$0xf0]  ;;  %v1895_v58 = vld [vmem:[#allocation5 + $0x2d0] sm:$0xf] }
  0x2a   :  { %285 = vmatpush.bf16.msra.mxu1 %v1428_v20  ;;  %v2136_v59 = vld [vmem:[#allocation5 + $0x2d8] sm:$0xf0]  ;;  %v1691_v60 = vld [vmem:[#allocation5 + $0x138] sm:$0xf]  ;;  %v2085_v61 = vld [vmem:[#allocation5 + $0x140] sm:$0xf0]  ;;  %v1800_v62 = vor.u32 %v2112_v55, %v1799_v54  ;;  %v1596_v63 = vor.u32 %v2061_v57, %v1595_v53 }
  0x2b   :  { %299 = vmatpush.bf16.msra.mxu2 %v1432_v21  ;;  %313 = vmatpush.bf16.msra.mxu3 %v1436_v25  ;;  %v1896_v0 = vor.u32 %v2136_v59, %v1895_v58  ;;  %v1583_v1 = vld [vmem:[#allocation5 + $0x60] sm:$0xf]  ;;  %v1787_v2 = vld [vmem:[#allocation5 + $0x1f8] sm:$0xf]  ;;  %v2109_v3 = vld [vmem:[#allocation5 + $0x200] sm:$0xf0]  ;;  %v1692_v4 = vor.u32 %v2085_v61, %v1691_v60 }
  0x2c   :  { %v2058_v5 = vld [vmem:[#allocation5 + $0x68] sm:$0xf0]  ;;  %v1883_v6 = vld [vmem:[#allocation5 + $0x2b8] sm:$0xf]  ;;  %v2133_v7 = vld [vmem:[#allocation5 + $0x2c0] sm:$0xf0]  ;;  %v1788_v10 = vor.u32 %v2109_v3, %v1787_v2 }
  0x2d   :  { %272 = vmatpush.bf16.msra.mxu0 %v1408_v32  ;;  %v1679_v8 = vld [vmem:[#allocation5 + $0x120] sm:$0xf]  ;;  %v2082_v9 = vld [vmem:[#allocation5 + $0x128] sm:$0xf0]  ;;  %v1584_v11 = vor.u32 %v2058_v5, %v1583_v1  ;;  %v1884_v12 = vor.u32 %v2133_v7, %v1883_v6  ;;  %v1571_v13 = vld [vmem:[#allocation5 + $0x48] sm:$0xf] }
  0x2e   :  { %286 = vmatpush.bf16.msra.mxu1 %v1412_v36  ;;  %v1775_v14 = vld [vmem:[#allocation5 + $0x1e0] sm:$0xf]  ;;  %v2106_v15 = vld [vmem:[#allocation5 + $0x1e8] sm:$0xf0]  ;;  %v1680_v16 = vor.u32 %v2082_v9, %v1679_v8  ;;  %v2055_v17 = vld [vmem:[#allocation5 + $0x50] sm:$0xf0] }
  0x2f   :  { %300 = vmatpush.bf16.msra.mxu2 %v1416_v37  ;;  %314 = vmatpush.bf16.msra.mxu3 %v1420_v38  ;;  %v1871_v18 = vld [vmem:[#allocation5 + $0x2a0] sm:$0xf]  ;;  %v2130_v19 = vld [vmem:[#allocation5 + $0x2a8] sm:$0xf0]  ;;  %v1667_v20 = vld [vmem:[#allocation5 + $0x108] sm:$0xf]  ;;  %v1776_v22 = vor.u32 %v2106_v15, %v1775_v14  ;;  %v1572_v23 = vor.u32 %v2055_v17, %v1571_v13 }
  0x30   :  { %273 = vmatmul.bf16.vlgmr.msra.gmra.mxu0 %v62_v43  ;;  %v2079_v21 = vld [vmem:[#allocation5 + $0x110] sm:$0xf0]  ;;  %v1872_v24 = vor.u32 %v2130_v19, %v1871_v18  ;;  %v1559_v25 = vld [vmem:[#allocation5 + $0x30] sm:$0xf]  ;;  %v1763_v26 = vld [vmem:[#allocation5 + $0x1c8] sm:$0xf] }
  0x31   :  { %981 = vmatpush.bf16.msrb.mxu0 %v1620_v39  ;;  %287 = vmatmul.bf16.vlgmr.msra.gmra.mxu1 %v62_v43  ;;  %v2103_v27 = vld [vmem:[#allocation5 + $0x1d0] sm:$0xf0]  ;;  %v1668_v28 = vor.u32 %v2079_v21, %v1667_v20  ;;  %v2052_v29 = vld [vmem:[#allocation5 + $0x38] sm:$0xf0]  ;;  %v1859_v30 = vld [vmem:[#allocation5 + $0x288] sm:$0xf] }
  0x32   :  { %995 = vmatpush.bf16.msrb.mxu1 %v1716_v44  ;;  %301 = vmatmul.bf16.vlgmr.msra.gmra.mxu2 %v62_v43  ;;  %v2127_v31 = vld [vmem:[#allocation5 + $0x290] sm:$0xf0]  ;;  %v1655_v32 = vld [vmem:[#allocation5 + $0xf0] sm:$0xf]  ;;  %v2076_v33 = vld [vmem:[#allocation5 + $0xf8] sm:$0xf0]  ;;  %v1764_v34 = vor.u32 %v2103_v27, %v1763_v26  ;;  %v1560_v35 = vor.u32 %v2052_v29, %v1559_v25 }
  0x33   :  { %315 = vmatmul.bf16.vlgmr.msra.gmra.mxu3 %v62_v43  ;;  %1009 = vmatpush.bf16.msrb.mxu2 %v1812_v50  ;;  %v1860_v36 = vor.u32 %v2127_v31, %v1859_v30  ;;  %v1547_v37 = vld [vmem:[#allocation5 + $0x18] sm:$0xf]  ;;  %v1751_v38 = vld [vmem:[#allocation5 + $0x1b0] sm:$0xf]  ;;  %v2100_v39 = vld [vmem:[#allocation5 + $0x1b8] sm:$0xf0]  ;;  %v1656_v40 = vor.u32 %v2076_v33, %v1655_v32 }
  0x34   :  { %1023 = vmatpush.bf16.msrb.mxu3 %v1908_v52  ;;  %v2049_v41 = vld [vmem:[#allocation5 + $0x20] sm:$0xf0]  ;;  %v1847_v42 = vld [vmem:[#allocation5 + $0x270] sm:$0xf]  ;;  %v2124_v43 = vld [vmem:[#allocation5 + $0x278] sm:$0xf0]  ;;  %v1752_v46 = vor.u32 %v2100_v39, %v1751_v38 }
  0x35   :  { %982 = vmatpush.bf16.msrb.mxu0 %v1608_v51  ;;  %v1643_v44 = vld [vmem:[#allocation5 + $0xd8] sm:$0xf]  ;;  %v2073_v45 = vld [vmem:[#allocation5 + $0xe0] sm:$0xf0]  ;;  %v1535_v47 = vld [vmem:[#allocation5] sm:$0xf]  ;;  %v1548_v48 = vor.u32 %v2049_v41, %v1547_v37  ;;  %v1848_v49 = vor.u32 %v2124_v43, %v1847_v42 }
  0x36   :  { %996 = vmatpush.bf16.msrb.mxu1 %v1704_v56  ;;  %v2046_v50 = vld [vmem:[#allocation5 + $0x8] sm:$0xf0]  ;;  %v1739_v51 = vld [vmem:[#allocation5 + $0x198] sm:$0xf]  ;;  %v2097_v52 = vld [vmem:[#allocation5 + $0x1a0] sm:$0xf0]  ;;  %v1644_v53 = vor.u32 %v2073_v45, %v1643_v44 }
  0x37   :  { %1010 = vmatpush.bf16.msrb.mxu2 %v1800_v62  ;;  %v1631_v54 = vld [vmem:[#allocation5 + $0xc0] sm:$0xf]  ;;  %v1835_v55 = vld [vmem:[#allocation5 + $0x258] sm:$0xf]  ;;  %v2121_v56 = vld [vmem:[#allocation5 + $0x260] sm:$0xf0]  ;;  %v1740_v62 = vor.u32 %v2097_v52, %v1739_v51 }
  0x38   :  { %1024 = vmatpush.bf16.msrb.mxu3 %v1896_v0  ;;  %v2070_v57 = vld [vmem:[#allocation5 + $0xc8] sm:$0xf0]  ;;  %v1621_v59 = vld [vmem:[#allocation5 + $0xb4] sm:$0xf0]  ;;  %v1836_v0 = vor.u32 %v2121_v56, %v1835_v55  ;;  %v2063_v1 = vld [vmem:[#allocation5 + $0x94] sm:$0xf] }
  0x39   :  { %983 = vmatpush.bf16.msrb.mxu0 %v1596_v63  ;;  %v2066_v58 = vld [vmem:[#allocation5 + $0xac] sm:$0xf]  ;;  %v1717_v61 = vld [vmem:[#allocation5 + $0x174] sm:$0xf0]  ;;  %v1536_v63 = vor.u32 %v2046_v50, %v1535_v47  ;;  %v1727_v2 = vld [vmem:[#allocation5 + $0x180] sm:$0xf]  ;;  %v1632_v5 = vor.u32 %v2070_v57, %v1631_v54 }
  0x3a   :  { %997 = vmatpush.bf16.msrb.mxu1 %v1692_v4  ;;  %v2090_v60 = vld [vmem:[#allocation5 + $0x16c] sm:$0xf]  ;;  %v1823_v4 = vld [vmem:[#allocation5 + $0x240] sm:$0xf]  ;;  %v1624_v6 = vor.u32 %v2066_v58, %v1621_v59  ;;  %v1813_v9 = vld [vmem:[#allocation5 + $0x234] sm:$0xf0] }
  0x3b   :  { %1011 = vmatpush.bf16.msrb.mxu2 %v1788_v10  ;;  %v2094_v3 = vld [vmem:[#allocation5 + $0x188] sm:$0xf0]  ;;  %v1720_v10 = vor.u32 %v2090_v60, %v1717_v61  ;;  %v1909_v13 = vld [vmem:[#allocation5 + $0x2f4] sm:$0xf0]  ;;  %v2087_v14 = vld [vmem:[#allocation5 + $0x154] sm:$0xf] }
  0x3c   :  { %1025 = vmatpush.bf16.msrb.mxu3 %v1884_v12  ;;  %v2118_v7 = vld [vmem:[#allocation5 + $0x248] sm:$0xf0]  ;;  %v1705_v15 = vld [vmem:[#allocation5 + $0x15c] sm:$0xf0]  ;;  %v1693_v26 = vld [vmem:[#allocation5 + $0x144] sm:$0xf0] }
  0x3d   :  { %984 = vmatpush.bf16.msrb.mxu0 %v1584_v11  ;;  %v2114_v8 = vld [vmem:[#allocation5 + $0x22c] sm:$0xf]  ;;  %v1609_v11 = vld [vmem:[#allocation5 + $0x9c] sm:$0xf0]  ;;  %v1824_v17 = vor.u32 %v2118_v7, %v1823_v4  ;;  %v1708_v21 = vor.u32 %v2087_v14, %v1705_v15  ;;  %v2135_v30 = vld [vmem:[#allocation5 + $0x2d4] sm:$0xf] }
  0x3e   :  { %998 = vmatpush.bf16.msrb.mxu1 %v1680_v16  ;;  %v2138_v12 = vld [vmem:[#allocation5 + $0x2ec] sm:$0xf]  ;;  %v1728_v16 = vor.u32 %v2094_v3, %v1727_v2  ;;  %v1816_v18 = vor.u32 %v2114_v8, %v1813_v9  ;;  %v1612_v19 = vor.u32 %v2063_v1, %v1609_v11  ;;  %v1801_v29 = vld [vmem:[#allocation5 + $0x21c] sm:$0xf0]  ;;  %v2081_v37 = vld [vmem:[#allocation5 + $0x124] sm:$0xf] }
  0x3f   :  { %1012 = vmatpush.bf16.msrb.mxu2 %v1776_v22  ;;  %v1912_v20 = vor.u32 %v2138_v12, %v1909_v13  ;;  %v2060_v22 = vld [vmem:[#allocation5 + $0x7c] sm:$0xf]  ;;  %v1897_v32 = vld [vmem:[#allocation5 + $0x2dc] sm:$0xf0]  ;;  %v1681_v38 = vld [vmem:[#allocation5 + $0x12c] sm:$0xf0] }
  0x40   :  { %1026 = vmatpush.bf16.msrb.mxu3 %v1872_v24  ;;  %v2084_v24 = vld [vmem:[#allocation5 + $0x13c] sm:$0xf]  ;;  %v1900_v33 = vor.u32 %v2135_v30, %v1897_v32  ;;  %v1684_v39 = vor.u32 %v2081_v37, %v1681_v38  ;;  %v1789_v41 = vld [vmem:[#allocation5 + $0x204] sm:$0xf0]  ;;  %v1573_v47 = vld [vmem:[#allocation5 + $0x54] sm:$0xf0] }
  0x41   :  { %985 = vmatpush.bf16.msrb.mxu0 %v1572_v23  ;;  %v1597_v23 = vld [vmem:[#allocation5 + $0x84] sm:$0xf0]  ;;  %v1696_v27 = vor.u32 %v2084_v24, %v1693_v26  ;;  %v2132_v42 = vld [vmem:[#allocation5 + $0x2bc] sm:$0xf]  ;;  %v1669_v50 = vld [vmem:[#allocation5 + $0x114] sm:$0xf0] }
  0x42   :  { %999 = vmatpush.bf16.msrb.mxu1 %v1668_v28  ;;  %v1600_v25 = vor.u32 %v2060_v22, %v1597_v23  ;;  %v2111_v28 = vld [vmem:[#allocation5 + $0x214] sm:$0xf]  ;;  %v1885_v44 = vld [vmem:[#allocation5 + $0x2c4] sm:$0xf0]  ;;  %v2105_v52 = vld [vmem:[#allocation5 + $0x1e4] sm:$0xf] }
  0x43   :  { %1013 = vmatpush.bf16.msrb.mxu2 %v1764_v34  ;;  %v1804_v31 = vor.u32 %v2111_v28, %v1801_v29  ;;  %v2057_v34 = vld [vmem:[#allocation5 + $0x64] sm:$0xf]  ;;  %v1888_v45 = vor.u32 %v2132_v42, %v1885_v44  ;;  %v1873_v56 = vld [vmem:[#allocation5 + $0x2ac] sm:$0xf0]  ;;  %v2051_v58 = vld [vmem:[#allocation5 + $0x34] sm:$0xf] }
  0x44   :  { %1027 = vmatpush.bf16.msrb.mxu3 %v1860_v36  ;;  %v2129_v55 = vld [vmem:[#allocation5 + $0x2a4] sm:$0xf]  ;;  %v1561_v59 = vld [vmem:[#allocation5 + $0x3c] sm:$0xf0]  ;;  %v2075_v60 = vld [vmem:[#allocation5 + $0xf4] sm:$0xf] }
  0x45   :  { %986 = vmatpush.bf16.msrb.mxu0 %v1560_v35  ;;  %v1585_v35 = vld [vmem:[#allocation5 + $0x6c] sm:$0xf0]  ;;  %v1876_v57 = vor.u32 %v2129_v55, %v1873_v56  ;;  %v1564_v61 = vor.u32 %v2051_v58, %v1561_v59  ;;  %v1765_v1 = vld [vmem:[#allocation5 + $0x1d4] sm:$0xf0]  ;;  %v2126_v2 = vld [vmem:[#allocation5 + $0x28c] sm:$0xf] }
  0x46   :  { %1000 = vmatpush.bf16.msrb.mxu1 %v1656_v40  ;;  %v1588_v36 = vor.u32 %v2057_v34, %v1585_v35  ;;  %v2108_v40 = vld [vmem:[#allocation5 + $0x1fc] sm:$0xf]  ;;  %v1861_v4 = vld [vmem:[#allocation5 + $0x294] sm:$0xf0]  ;;  %v1549_v7 = vld [vmem:[#allocation5 + $0x24] sm:$0xf0] }
  0x47   :  { %1014 = vmatpush.bf16.msrb.mxu2 %v1752_v46  ;;  %v1792_v43 = vor.u32 %v2108_v40, %v1789_v41  ;;  %v2054_v46 = vld [vmem:[#allocation5 + $0x4c] sm:$0xf]  ;;  %v2072_v8 = vld [vmem:[#allocation5 + $0xdc] sm:$0xf]  ;;  %v2099_v12 = vld [vmem:[#allocation5 + $0x1b4] sm:$0xf] }
  0x48   :  { %1028 = vmatpush.bf16.msrb.mxu3 %v1848_v49  ;;  %v1576_v49 = vor.u32 %v2054_v46, %v1573_v47  ;;  %v1753_v13 = vld [vmem:[#allocation5 + $0x1bc] sm:$0xf0]  ;;  %v2123_v14 = vld [vmem:[#allocation5 + $0x274] sm:$0xf]  ;;  %v1633_v22 = vld [vmem:[#allocation5 + $0xcc] sm:$0xf0] }
  0x49   :  { %987 = vmatpush.bf16.msrb.mxu0 %v1548_v48  ;;  %v2078_v48 = vld [vmem:[#allocation5 + $0x10c] sm:$0xf]  ;;  %v1756_v15 = vor.u32 %v2099_v12, %v1753_v13  ;;  %v2096_v24 = vld [vmem:[#allocation5 + $0x19c] sm:$0xf]  ;;  %v2093_v30 = vld [vmem:[#allocation5 + $0x184] sm:$0xf] }
  0x4a   :  { %1001 = vmatpush.bf16.msrb.mxu1 %v1644_v53  ;;  %v1672_v51 = vor.u32 %v2078_v48, %v1669_v50  ;;  %v1777_v53 = vld [vmem:[#allocation5 + $0x1ec] sm:$0xf0]  ;;  %v2120_v26 = vld [vmem:[#allocation5 + $0x25c] sm:$0xf]  ;;  %v2117_v32 = vld [vmem:[#allocation5 + $0x244] sm:$0xf] }
  0x4b   :  { %1015 = vmatpush.bf16.msrb.mxu2 %v1740_v62  ;;  %v1780_v54 = vor.u32 %v2105_v52, %v1777_v53  ;;  %v1657_v62 = vld [vmem:[#allocation5 + $0xfc] sm:$0xf0]  ;;  %v1825_v34 = vld [vmem:[#allocation5 + $0x24c] sm:$0xf0]  ;;  %v2068_v55 = vld [vmem:[#allocation5 + $0xb8] sm:$0xf0] }
  0x4c   :  { %1029 = vmatpush.bf16.msrb.mxu3 %v1836_v0  ;;  %v2102_v0 = vld [vmem:[#allocation5 + $0x1cc] sm:$0xf]  ;;  %v1828_v35 = vor.u32 %v2117_v32, %v1825_v34  ;;  %v95_v37 = vld [vmem:[%s2424_s2] sm:$0xf]  ;;  %v1723_v59 = vld [vmem:[#allocation5 + $0x170] sm:$0xf] }
  0x4d   :  { %988 = vmatpush.bf16.msrb.mxu0 %v1536_v63  ;;  %v1660_v63 = vor.u32 %v2075_v60, %v1657_v62  ;;  %v1768_v3 = vor.u32 %v2102_v0, %v1765_v1  ;;  %v98_v40 = vperm.slane %v95_v37, 1  ;;  %v99_v44 = vperm.slane %v95_v37, 2  ;;  %v2092_v60 = vld [vmem:[#allocation5 + $0x178] sm:$0xf0]  ;;  %v1915_v13 = vld [vmem:[#allocation5 + $0x2f0] sm:$0xf] }
  0x4e   :  { %1002 = vmatpush.bf16.msrb.mxu1 %v1632_v5  ;;  %v1864_v5 = vor.u32 %v2126_v2, %v1861_v4  ;;  %v100_v47 = vperm.slane %v95_v37, 3  ;;  %v1615_v4 = vld [vmem:[#allocation5 + $0x98] sm:$0xf]  ;;  %v2059_v34 = vld [vmem:[#allocation5 + $0x70] sm:$0xf0] }
  0x4f   :  { %1016 = vmatpush.bf16.msrb.mxu2 %v1728_v16  ;;  %v1849_v16 = vld [vmem:[#allocation5 + $0x27c] sm:$0xf0] }
  0x50   :  { %1030 = vmatpush.bf16.msrb.mxu3 %v1824_v17  ;;  %v1852_v17 = vor.u32 %v2123_v14, %v1849_v16  ;;  %v2140_v14 = vld [vmem:[#allocation5 + $0x2f8] sm:$0xf0] }
  0x51   :  { %1037 = vmatpush.bf16.msra.mxu0 %v1624_v6  ;;  %v2048_v6 = vld [vmem:[#allocation5 + $0x1c] sm:$0xf] }
  0x52   :  { %1051 = vmatpush.bf16.msra.mxu1 %v1720_v10  ;;  %v1552_v9 = vor.u32 %v2048_v6, %v1549_v7  ;;  %v1645_v10 = vld [vmem:[#allocation5 + $0xe4] sm:$0xf0]  ;;  %v1711_v7 = vld [vmem:[#allocation5 + $0x158] sm:$0xf] }
  0x53   :  { %1065 = vmatpush.bf16.msra.mxu2 %v1816_v18  ;;  %v1648_v11 = vor.u32 %v2072_v8, %v1645_v10  ;;  %v2045_v18 = vld [vmem:[#allocation5 + $0x4] sm:$0xf]  ;;  %v2116_v10 = vld [vmem:[#allocation5 + $0x238] sm:$0xf0] }
  0x54   :  { %1079 = vmatpush.bf16.msra.mxu3 %v1912_v20  ;;  %v2069_v20 = vld [vmem:[#allocation5 + $0xc4] sm:$0xf] }
  0x55   :  { %1038 = vmatpush.bf16.msra.mxu0 %v1612_v19  ;;  %v1537_v19 = vld [vmem:[#allocation5 + $0xc] sm:$0xf0]  ;;  %v1636_v23 = vor.u32 %v2069_v20, %v1633_v22  ;;  %v2089_v8 = vld [vmem:[#allocation5 + $0x160] sm:$0xf0]  ;;  %v2086_v22 = vld [vmem:[#allocation5 + $0x148] sm:$0xf0] }
  0x56   :  { %1052 = vmatpush.bf16.msra.mxu1 %v1708_v21  ;;  %v1540_v21 = vor.u32 %v2045_v18, %v1537_v19  ;;  %v1712_v16 = vor.u32 %v2089_v8, %v1711_v7  ;;  %v2062_v18 = vld [vmem:[#allocation5 + $0x88] sm:$0xf0]  ;;  %v1555_v7 = vld [vmem:[#allocation5 + $0x20] sm:$0xf] }
  0x57   :  { %1066 = vmatpush.bf16.msra.mxu2 %v1804_v31  ;;  %v1729_v31 = vld [vmem:[#allocation5 + $0x18c] sm:$0xf0]  ;;  %v2050_v8 = vld [vmem:[#allocation5 + $0x28] sm:$0xf0] }
  0x58   :  { %1080 = vmatpush.bf16.msra.mxu3 %v1900_v33  ;;  %v1732_v33 = vor.u32 %v2093_v30, %v1729_v31  ;;  %v1903_v30 = vld [vmem:[#allocation5 + $0x2d8] sm:$0xf]  ;;  %v2137_v31 = vld [vmem:[#allocation5 + $0x2e0] sm:$0xf0] }
  0x59   :  { %1039 = vmatpush.bf16.msra.mxu0 %v1600_v25  ;;  %v1741_v25 = vld [vmem:[#allocation5 + $0x1a4] sm:$0xf0] }
  0x5a   :  { %1053 = vmatpush.bf16.msra.mxu1 %v1696_v27  ;;  %v1837_v27 = vld [vmem:[#allocation5 + $0x264] sm:$0xf0]  ;;  %v1744_v28 = vor.u32 %v2096_v24, %v1741_v25  ;;  %v1916_v25 = vor.u32 %v2140_v14, %v1915_v13  ;;  %v1759_v13 = vld [vmem:[#allocation5 + $0x1b8] sm:$0xf]  ;;  %v2101_v14 = vld [vmem:[#allocation5 + $0x1c0] sm:$0xf0] }
  0x5b   :  { %1067 = vmatpush.bf16.msra.mxu2 %v1792_v43  ;;  %v1840_v29 = vor.u32 %v2120_v26, %v1837_v27  ;;  %v1807_v26 = vld [vmem:[#allocation5 + $0x218] sm:$0xf]  ;;  %v2113_v27 = vld [vmem:[#allocation5 + $0x220] sm:$0xf0] }
  0x5c   :  { %1081 = vmatpush.bf16.msra.mxu3 %v1888_v45 }
  0x5d   :  { %1040 = vmatpush.bf16.msra.mxu0 %v1588_v36 }
  0x5e   :  { %1054 = vmatpush.bf16.msra.mxu1 %v1684_v39  ;;  %v97_v39 = vperm.slane %v95_v37, 0  ;;  %v2083_v37 = vld [vmem:[#allocation5 + $0x130] sm:$0xf0] }
  0x5f   :  { %1068 = vmatpush.bf16.msra.mxu2 %v1780_v54  ;;  %v1627_v54 = vld [vmem:[#allocation5 + $0xb0] sm:$0xf] }
  0x60   :  { %1082 = vmatpush.bf16.msra.mxu3 %v1876_v57  ;;  %v1628_v0 = vor.u32 %v2068_v55, %v1627_v54  ;;  %v1879_v54 = vld [vmem:[#allocation5 + $0x2a8] sm:$0xf]  ;;  %v2131_v55 = vld [vmem:[#allocation5 + $0x2b0] sm:$0xf0] }
  0x61   :  { %1041 = vmatpush.bf16.msra.mxu0 %v1576_v49 }
  0x62   :  { %1055 = vmatpush.bf16.msra.mxu1 %v1672_v51 }
  0x63   :  { %1069 = vmatpush.bf16.msra.mxu2 %v1768_v3  ;;  %v1724_v3 = vor.u32 %v2092_v60, %v1723_v59  ;;  %v1663_v60 = vld [vmem:[#allocation5 + $0xf8] sm:$0xf] }
  0x64   :  { %1083 = vmatpush.bf16.msra.mxu3 %v1864_v5  ;;  %v2065_v5 = vld [vmem:[#allocation5 + $0xa0] sm:$0xf0] }
  0x65   :  { %1042 = vmatpush.bf16.msra.mxu0 %v1564_v61  ;;  %v1616_v12 = vor.u32 %v2065_v5, %v1615_v4  ;;  %v2128_v4 = vld [vmem:[#allocation5 + $0x298] sm:$0xf0] }
  0x66   :  { %1056 = vmatpush.bf16.msra.mxu1 %v1660_v63 }
  0x67   :  { %1070 = vmatpush.bf16.msra.mxu2 %v1756_v15 }
  0x68   :  { %1084 = vmatpush.bf16.msra.mxu3 %v1852_v17  ;;  %v1603_v17 = vld [vmem:[#allocation5 + $0x80] sm:$0xf] }
  0x69   :  { %1043 = vmatpush.bf16.msra.mxu0 %v1552_v9  ;;  %v1819_v9 = vld [vmem:[#allocation5 + $0x230] sm:$0xf] }
  0x6a   :  { %1057 = vmatpush.bf16.msra.mxu1 %v1648_v11  ;;  %v1820_v20 = vor.u32 %v2116_v10, %v1819_v9  ;;  %v1651_v10 = vld [vmem:[#allocation5 + $0xe0] sm:$0xf] }
  0x6b   :  { %1071 = vmatpush.bf16.msra.mxu2 %v1744_v28 }
  0x6c   :  { %1085 = vmatpush.bf16.msra.mxu3 %v1840_v29  ;;  %v1604_v29 = vor.u32 %v2062_v18, %v1603_v17  ;;  %v2125_v17 = vld [vmem:[#allocation5 + $0x280] sm:$0xf0] }
  0x6d   :  { %1044 = vmatpush.bf16.msra.mxu0 %v1540_v21  ;;  %v1699_v21 = vld [vmem:[#allocation5 + $0x140] sm:$0xf] }
  0x6e   :  { %1058 = vmatpush.bf16.msra.mxu1 %v1636_v23  ;;  %v1700_v32 = vor.u32 %v2086_v22, %v1699_v21  ;;  %v1760_v21 = vor.u32 %v2101_v14, %v1759_v13  ;;  %v1639_v22 = vld [vmem:[#allocation5 + $0xc8] sm:$0xf] }
  0x6f   :  { %1072 = vmatpush.bf16.msra.mxu2 %v1732_v33  ;;  %v1591_v33 = vld [vmem:[#allocation5 + $0x68] sm:$0xf] }
  0x70   :  { %1086 = vmatpush.bf16.msra.mxu3 %v1828_v35  ;;  %v1808_v35 = vor.u32 %v2113_v27, %v1807_v26  ;;  %v1747_v26 = vld [vmem:[#allocation5 + $0x1a0] sm:$0xf]  ;;  %v2098_v27 = vld [vmem:[#allocation5 + $0x1a8] sm:$0xf0] }
  0xad   :  { %v274_v36 = vpop.f32.mrf.mxu0 }
  0xae   :  { %v288_v38 = vpop.f32.mrf.mxu1  ;;  %v275_v41 = vadd.f32 %v274_v36, %v97_v39  ;;  %v1687_v36 = vld [vmem:[#allocation5 + $0x128] sm:$0xf] }
  0xaf   :  { %v289_v42 = vadd.f32 %v288_v38, %v98_v40  ;;  %v1904_v38 = vor.u32 %v2137_v31, %v1903_v30  ;;  %v1843_v30 = vld [vmem:[#allocation5 + $0x260] sm:$0xf]  ;;  %v2122_v31 = vld [vmem:[#allocation5 + $0x268] sm:$0xf0] }
  0xb0   :  { %2172 = vtanh.f32 %v275_v41  ;;  %v1592_v41 = vor.u32 %v2059_v34, %v1591_v33  ;;  %v1748_v33 = vor.u32 %v2098_v27, %v1747_v26  ;;  %v1844_v34 = vor.u32 %v2122_v31, %v1843_v30 }
  0xb1   :  { %2174 = vtanh.f32 %v289_v42  ;;  %v1891_v42 = vld [vmem:[#allocation5 + $0x2c0] sm:$0xf] }
  0xb5   :  { %v302_v43 = vpop.f32.mrf.mxu2  ;;  %v276_v46 = vpop.f32.mrf.mxu0 }
  0xb6   :  { %v316_v45 = vpop.f32.mrf.mxu3  ;;  %v277_v48 = vadd.f32 %v276_v46, %v97_v39  ;;  %v290_v49 = vpop.f32.mrf.mxu1  ;;  %v303_v51 = vadd.f32 %v302_v43, %v99_v44  ;;  %v1795_v39 = vld [vmem:[#allocation5 + $0x200] sm:$0xf]  ;;  %v2134_v43 = vld [vmem:[#allocation5 + $0x2c8] sm:$0xf0]  ;;  %v2056_v46 = vld [vmem:[#allocation5 + $0x58] sm:$0xf0] }
  0xb7   :  { %v291_v50 = vadd.f32 %v290_v49, %v98_v40  ;;  %v317_v52 = vadd.f32 %v316_v45, %v100_v47  ;;  %v2173_v56 = vpop.eup %2172  ;;  %v2110_v40 = vld [vmem:[#allocation5 + $0x208] sm:$0xf0]  ;;  %v1579_v45 = vld [vmem:[#allocation5 + $0x50] sm:$0xf]  ;;  %v2080_v49 = vld [vmem:[#allocation5 + $0x118] sm:$0xf0] }
  0xb8   :  { %2176 = vtanh.f32 %v277_v48  ;;  %v2175_v61 = vpop.eup %2174  ;;  %v1675_v48 = vld [vmem:[#allocation5 + $0x110] sm:$0xf] }
  0xb9   :  { %2178 = vtanh.f32 %v291_v50  ;;  %v1892_v50 = vor.u32 %v2134_v43, %v1891_v42  ;;  %v2147_v42 = vld [vmem:[%s2427_s5 + $0x30] sm:$0xff] }
  0xba   :  { %2180 = vtanh.f32 %v303_v51  ;;  %v1783_v51 = vld [vmem:[#allocation5 + $0x1e8] sm:$0xf]  ;;  %v2143_v43 = vld [vmem:[%s2427_s5 + $0x10] sm:$0xff] }
  0xbb   :  { %2182 = vtanh.f32 %v317_v52  ;;  %v2107_v52 = vld [vmem:[#allocation5 + $0x1f0] sm:$0xf0] }
  0xbc   :  { %v1784_v59 = vor.u32 %v2107_v52, %v1783_v51  ;;  %v2152_v51 = vld [vmem:[%s2427_s5 + $0x58] sm:$0xff] }
  0xbd   :  { %v304_v53 = vpop.f32.mrf.mxu2  ;;  %v2164_v52 = vld [vmem:[%s2427_s5 + $0xb8] sm:$0xff] }
  0xbe   :  { %v305_v57 = vadd.f32 %v304_v53, %v99_v44  ;;  %v318_v58 = vpop.f32.mrf.mxu3  ;;  %v2177_v63 = vpop.eup %2176  ;;  %v1688_v44 = vor.u32 %v2083_v37, %v1687_v36  ;;  %v1580_v53 = vor.u32 %v2056_v46, %v1579_v45  ;;  %v2095_v36 = vld [vmem:[#allocation5 + $0x190] sm:$0xf0]  ;;  %v1831_v37 = vld [vmem:[#allocation5 + $0x248] sm:$0xf] }
  0xbf   :  { %v319_v62 = vadd.f32 %v318_v58, %v100_v47  ;;  %v2179_v1 = vpop.eup %2178  ;;  %v2316_v2 = vpack.c.bf16 %v2177_v63, %v2173_v56  ;;  %v1796_v47 = vor.u32 %v2110_v40, %v1795_v39  ;;  %v1676_v56 = vor.u32 %v2080_v49, %v1675_v48  ;;  %v2053_v58 = vld [vmem:[#allocation5 + $0x40] sm:$0xf0]  ;;  %v1771_v63 = vld [vmem:[#allocation5 + $0x1d0] sm:$0xf] }
  0xc0   :  { %2184 = vtanh.f32 %v305_v57  ;;  %v2318_v6 = vpack.c.bf16 %v2179_v1, %v2175_v61  ;;  %v2181_v11 = vpop.eup %2180  ;;  %v1567_v57 = vld [vmem:[#allocation5 + $0x38] sm:$0xf]  ;;  %v2077_v61 = vld [vmem:[#allocation5 + $0x100] sm:$0xf0] }
  0xc1   :  { %2186 = vtanh.f32 %v319_v62  ;;  %989 = vmatmul.bf16.vlgmr.msrb.gmra.mxu0 %v2316_v2  ;;  %v2183_v15 = vpop.eup %2182  ;;  %v1880_v62 = vor.u32 %v2131_v55, %v1879_v54  ;;  %v1568_v1 = vor.u32 %v2053_v58, %v1567_v57  ;;  %v1664_v5 = vor.u32 %v2077_v61, %v1663_v60  ;;  %v2142_v45 = vld [vmem:[%s2427_s5 + $0x8] sm:$0xff]  ;;  %v2153_v48 = vld [vmem:[%s2427_s5 + $0x60] sm:$0xff]  ;;  %v2151_v55 = vld [vmem:[%s2427_s5 + $0x50] sm:$0xff] }
  0xc2   :  { %1003 = vmatmul.bf16.vlgmr.msrb.gmra.mxu1 %v2318_v6  ;;  %1093 = vmatpush.bf16.msrb.mxu0 %v1628_v0  ;;  %v2104_v0 = vld [vmem:[#allocation5 + $0x1d8] sm:$0xf0]  ;;  %v2154_v46 = vld [vmem:[%s2427_s5 + $0x68] sm:$0xff] }
  0xc3   :  { %1107 = vmatpush.bf16.msrb.mxu1 %v1724_v3  ;;  %v1867_v3 = vld [vmem:[#allocation5 + $0x290] sm:$0xf]  ;;  %v1772_v9 = vor.u32 %v2104_v0, %v1771_v63  ;;  %v2150_v60 = vld [vmem:[%s2427_s5 + $0x48] sm:$0xff] }
  0xc4   :  { %v2162_v61 = vld [vmem:[%s2427_s5 + $0xa8] sm:$0xff] }
  0xc6   :  { %v2185_v19 = vpop.eup %2184  ;;  %1094 = vmatpush.bf16.msrb.mxu0 %v1616_v12  ;;  %v1868_v12 = vor.u32 %v2128_v4, %v1867_v3  ;;  %v2161_v3 = vld [vmem:[%s2427_s5 + $0xa0] sm:$0xff] }
  0xc7   :  { %v2187_v23 = vpop.eup %2186  ;;  %v2322_v24 = vpack.c.bf16 %v2185_v19, %v2181_v11  ;;  %1108 = vmatpush.bf16.msrb.mxu1 %v1712_v16  ;;  %v2074_v11 = vld [vmem:[#allocation5 + $0xe8] sm:$0xf0]  ;;  %v1855_v16 = vld [vmem:[#allocation5 + $0x278] sm:$0xf]  ;;  %v1543_v19 = vld [vmem:[#allocation5 + $0x8] sm:$0xf] }
  0xc8   :  { %v2324_v28 = vpack.c.bf16 %v2187_v23, %v2183_v15  ;;  %v1556_v15 = vor.u32 %v2050_v8, %v1555_v7  ;;  %v1652_v18 = vor.u32 %v2074_v11, %v1651_v10  ;;  %v2071_v23 = vld [vmem:[#allocation5 + $0xd0] sm:$0xf0] }
  0xc9   :  { %1017 = vmatmul.bf16.vlgmr.msrb.gmra.mxu2 %v2322_v24  ;;  %v2160_v8 = vld [vmem:[%s2427_s5 + $0x98] sm:$0xff] }
  0xca   :  { %1031 = vmatmul.bf16.vlgmr.msrb.gmra.mxu3 %v2324_v28  ;;  %1121 = vmatpush.bf16.msrb.mxu2 %v1820_v20  ;;  %v2047_v20 = vld [vmem:[#allocation5 + $0x10] sm:$0xf0] }
  0xcb   :  { %1135 = vmatpush.bf16.msrb.mxu3 %v1916_v25  ;;  %1095 = vmatpush.bf16.msrb.mxu0 %v1604_v29  ;;  %v1856_v25 = vor.u32 %v2125_v17, %v1855_v16  ;;  %v1544_v29 = vor.u32 %v2047_v20, %v1543_v19  ;;  %v2159_v16 = vld [vmem:[%s2427_s5 + $0x90] sm:$0xff]  ;;  %v2158_v19 = vld [vmem:[%s2427_s5 + $0x88] sm:$0xff] }
  0xcc   :  { %1109 = vmatpush.bf16.msrb.mxu1 %v1700_v32  ;;  %v1640_v32 = vor.u32 %v2071_v23, %v1639_v22  ;;  %v2157_v22 = vld [vmem:[%s2427_s5 + $0x80] sm:$0xff] }
  0xce   :  { %1122 = vmatpush.bf16.msrb.mxu2 %v1808_v35  ;;  %v1735_v35 = vld [vmem:[#allocation5 + $0x188] sm:$0xf] }
  0xcf   :  { %1136 = vmatpush.bf16.msrb.mxu3 %v1904_v38  ;;  %1096 = vmatpush.bf16.msrb.mxu0 %v1592_v41  ;;  %v2119_v38 = vld [vmem:[#allocation5 + $0x250] sm:$0xf0]  ;;  %v1736_v39 = vor.u32 %v2095_v36, %v1735_v35 }
  0xd0   :  { %1110 = vmatpush.bf16.msrb.mxu1 %v1688_v44  ;;  %v1832_v40 = vor.u32 %v2119_v38, %v1831_v37  ;;  %v2148_v41 = vld [vmem:[%s2427_s5 + $0x38] sm:$0xff]  ;;  %v2155_v44 = vld [vmem:[%s2427_s5 + $0x70] sm:$0xff] }
  0xd1   :  { %1045 = vmatmul.bf16.vlgmr.msra.gmra.mxu0 %v2316_v2 }
  0xd2   :  { %1123 = vmatpush.bf16.msrb.mxu2 %v1796_v47  ;;  %1059 = vmatmul.bf16.vlgmr.msra.gmra.mxu1 %v2318_v6  ;;  %v2141_v47 = vld [vmem:[%s2427_s5] sm:$0xff] }
  0xd3   :  { %1137 = vmatpush.bf16.msrb.mxu3 %v1892_v50  ;;  %1097 = vmatpush.bf16.msrb.mxu0 %v1580_v53  ;;  %v2381_v53 = vld [vmem:[%s2426_s4] sm:$0x7] }
  0xd4   :  { %1111 = vmatpush.bf16.msrb.mxu1 %v1676_v56  ;;  %v463_v54 = vperm.slane %v2381_v53, 0  ;;  %v2163_v56 = vld [vmem:[%s2427_s5 + $0xb0] sm:$0xff] }
  0xd6   :  { %1124 = vmatpush.bf16.msrb.mxu2 %v1784_v59 }
  0xd7   :  { %1138 = vmatpush.bf16.msrb.mxu3 %v1880_v62  ;;  %1098 = vmatpush.bf16.msrb.mxu0 %v1568_v1  ;;  %v2149_v1 = vld [vmem:[%s2427_s5 + $0x40] sm:$0xff] }
  0xd8   :  { %1112 = vmatpush.bf16.msrb.mxu1 %v1664_v5 }
  0xd9   :  { %1073 = vmatmul.bf16.vlgmr.msra.gmra.mxu2 %v2322_v24 }
  0xda   :  { %1087 = vmatmul.bf16.vlgmr.msra.gmra.mxu3 %v2324_v28  ;;  %1125 = vmatpush.bf16.msrb.mxu2 %v1772_v9 }
  0xdb   :  { %1139 = vmatpush.bf16.msrb.mxu3 %v1868_v12  ;;  %1099 = vmatpush.bf16.msrb.mxu0 %v1556_v15  ;;  %v464_v15 = vperm.slane %v2381_v53, 1 }
  0xdc   :  { %1113 = vmatpush.bf16.msrb.mxu1 %v1652_v18 }
  0xde   :  { %1126 = vmatpush.bf16.msrb.mxu2 %v1760_v21 }
  0xdf   :  { %1140 = vmatpush.bf16.msrb.mxu3 %v1856_v25  ;;  %1100 = vmatpush.bf16.msrb.mxu0 %v1544_v29 }
  0xe0   :  { %1114 = vmatpush.bf16.msrb.mxu1 %v1640_v32 }
  0xe2   :  { %1127 = vmatpush.bf16.msrb.mxu2 %v1748_v33  ;;  %1101 = vmatmul.bf16.vlgmr.msrb.gmra.mxu0 %v2316_v2  ;;  %v2146_v2 = vld [vmem:[%s2427_s5 + $0x28] sm:$0xff] }
  0xe3   :  { %1141 = vmatpush.bf16.msrb.mxu3 %v1844_v34  ;;  %1115 = vmatmul.bf16.vlgmr.msrb.gmra.mxu1 %v2318_v6  ;;  %v2145_v6 = vld [vmem:[%s2427_s5 + $0x20] sm:$0xff] }
  0xe4   :  { %1354 = vmatpush.bf16.msra.mxu0 %v2148_v41 }
  0xe6   :  { %1128 = vmatpush.bf16.msrb.mxu2 %v1736_v39  ;;  %v465_v39 = vperm.slane %v2381_v53, 2 }
  0xe7   :  { %1142 = vmatpush.bf16.msrb.mxu3 %v1832_v40 }
  0xe8   :  { %1355 = vmatpush.bf16.msra.mxu0 %v2147_v42 }
  0xe9   :  { %1129 = vmatmul.bf16.vlgmr.msrb.gmra.mxu2 %v2322_v24  ;;  %v2144_v24 = vld [vmem:[%s2427_s5 + $0x18] sm:$0xff] }
  0xea   :  { %1143 = vmatmul.bf16.vlgmr.msrb.gmra.mxu3 %v2324_v28  ;;  %v2156_v28 = vld [vmem:[%s2427_s5 + $0x78] sm:$0xff]  ;;  %1382 = vmatpush.bf16.msra.mxu2 %v2164_v52 }
  0xeb   :  { %1368 = vmatpush.bf16.msra.mxu1 %v2156_v28 }
  0xec   :  { %1356 = vmatpush.bf16.msra.mxu0 %v2146_v2 }
  0xee   :  { %1383 = vmatpush.bf16.msra.mxu2 %v2163_v56 }
  0xef   :  { %1369 = vmatpush.bf16.msra.mxu1 %v2155_v44 }
  0xf0   :  { %1357 = vmatpush.bf16.msra.mxu0 %v2145_v6 }
  0xf2   :  { %1384 = vmatpush.bf16.msra.mxu2 %v2162_v61 }
  0xf3   :  { %1370 = vmatpush.bf16.msra.mxu1 %v2154_v46 }
  0xf4   :  { %1358 = vmatpush.bf16.msra.mxu0 %v2144_v24 }
  0xf6   :  { %1385 = vmatpush.bf16.msra.mxu2 %v2161_v3 }
  0xf7   :  { %1371 = vmatpush.bf16.msra.mxu1 %v2153_v48 }
  0xf8   :  { %1359 = vmatpush.bf16.msra.mxu0 %v2143_v43 }
  0xfa   :  { %1386 = vmatpush.bf16.msra.mxu2 %v2160_v8 }
  0xfb   :  { %1372 = vmatpush.bf16.msra.mxu1 %v2152_v51 }
  0xfc   :  { %1360 = vmatpush.bf16.msra.mxu0 %v2142_v45 }
  0xfe   :  { %1387 = vmatpush.bf16.msra.mxu2 %v2159_v16 }
  0xff   :  { %1373 = vmatpush.bf16.msra.mxu1 %v2151_v55 }
 0x100   :  { %1361 = vmatpush.bf16.msra.mxu0 %v2141_v47 }
 0x102   :  { %1388 = vmatpush.bf16.msra.mxu2 %v2158_v19 }
 0x103   :  { %1374 = vmatpush.bf16.msra.mxu1 %v2150_v60 }
 0x106   :  { %1389 = vmatpush.bf16.msra.mxu2 %v2157_v22 }
 0x107   :  { %1375 = vmatpush.bf16.msra.mxu1 %v2149_v1 }
 0x13e   :  { %v990_v49 = vpop.f32.mrf.mxu0 }
 0x13f   :  { %v1004_v50 = vpop.f32.mrf.mxu1  ;;  %v991_v58 = vadd.f32 %v990_v49, %v463_v54 }
 0x141   :  { %v1005_v0 = vadd.f32 %v1004_v50, %v991_v58 }
 0x146   :  { %v992_v57 = vpop.f32.mrf.mxu0 }
 0x147   :  { %v1006_v59 = vpop.f32.mrf.mxu1  ;;  %v993_v4 = vadd.f32 %v992_v57, %v463_v54 }
 0x149   :  { %v1007_v9 = vadd.f32 %v1006_v59, %v993_v4  ;;  %v2171_v59 = vld [vmem:[#allocation2] ss:$0 sm:$0xff] }
 0x14c   :  { %v1018_v62 = vpop.f32.mrf.mxu2 }
 0x14d   :  { %v1032_v63 = vpop.f32.mrf.mxu3  ;;  %v1019_v5 = vadd.f32 %v1018_v62, %v1005_v0 }
 0x14e   :  { %v1046_v7 = vpop.f32.mrf.mxu0 }
 0x14f   :  { %v1033_v10 = vadd.f32 %v1032_v63, %v1019_v5  ;;  %v1060_v11 = vpop.f32.mrf.mxu1  ;;  %v1047_v20 = vadd.f32 %v1046_v7, %v464_v15 }
 0x151   :  { %2188 = vtanh.f32 %v1033_v10  ;;  %v1061_v26 = vadd.f32 %v1060_v11, %v1047_v20 }
 0x154   :  { %v1020_v12 = vpop.f32.mrf.mxu2 }
 0x155   :  { %v1021_v13 = vadd.f32 %v1020_v12, %v1007_v9  ;;  %v1034_v14 = vpop.f32.mrf.mxu3 }
 0x156   :  { %v1048_v18 = vpop.f32.mrf.mxu0 }
 0x157   :  { %v1035_v17 = vadd.f32 %v1034_v14, %v1021_v13  ;;  %v2189_v25 = vpop.eup %2188  ;;  %v1062_v27 = vpop.f32.mrf.mxu1  ;;  %v1049_v30 = vadd.f32 %v1048_v18, %v464_v15 }
 0x159   :  { %2190 = vtanh.f32 %v1035_v17  ;;  %v1063_v34 = vadd.f32 %v1062_v27, %v1049_v30 }
 0x15c   :  { %v1074_v21 = vpop.f32.mrf.mxu2 }
 0x15d   :  { %v1088_v23 = vpop.f32.mrf.mxu3  ;;  %v1075_v31 = vadd.f32 %v1074_v21, %v1061_v26 }
 0x15f   :  { %v2191_v29 = vpop.eup %2190  ;;  %v1102_v33 = vpop.f32.mrf.mxu0  ;;  %v1089_v35 = vadd.f32 %v1088_v23, %v1075_v31 }
 0x160   :  { %v1155_v32 = vpack.c.bf16 %v2191_v29, %v2189_v25  ;;  %v1116_v41 = vpop.f32.mrf.mxu1  ;;  %v1103_v42 = vadd.f32 %v1102_v33, %v465_v39 }
 0x161   :  { %2192 = vtanh.f32 %v1089_v35 }
 0x162   :  { %1362 = vmatmul.bf16.vlgmr.msra.gmra.mxu0 %v1155_v32  ;;  %v1117_v43 = vadd.f32 %v1116_v41, %v1103_v42 }
 0x164   :  { %v1076_v36 = vpop.f32.mrf.mxu2 }
 0x165   :  { %v1077_v37 = vadd.f32 %v1076_v36, %v1063_v34  ;;  %v1090_v38 = vpop.f32.mrf.mxu3 }
 0x167   :  { %v1091_v40 = vadd.f32 %v1090_v38, %v1077_v37  ;;  %v1104_v2 = vpop.f32.mrf.mxu0  ;;  %v2193_v28 = vpop.eup %2192 }
 0x168   :  { %v1105_v45 = vadd.f32 %v1104_v2, %v465_v39  ;;  %v1118_v48 = vpop.f32.mrf.mxu1 }
 0x169   :  { %2194 = vtanh.f32 %v1091_v40 }
 0x16a   :  { %v1119_v49 = vadd.f32 %v1118_v48, %v1105_v45 }
 0x16c   :  { %v1130_v6 = vpop.f32.mrf.mxu2 }
 0x16d   :  { %v1144_v24 = vpop.f32.mrf.mxu3  ;;  %v1131_v46 = vadd.f32 %v1130_v6, %v1117_v43 }
 0x16f   :  { %v2195_v44 = vpop.eup %2194  ;;  %v1145_v50 = vadd.f32 %v1144_v24, %v1131_v46 }
 0x170   :  { %v1156_v47 = vpack.c.bf16 %v2195_v44, %v2193_v28 }
 0x171   :  { %2196 = vtanh.f32 %v1145_v50 }
 0x172   :  { %1376 = vmatmul.bf16.vlgmr.msra.gmra.mxu1 %v1156_v47 }
 0x174   :  { %v1132_v51 = vpop.f32.mrf.mxu2 }
 0x175   :  { %v1133_v52 = vadd.f32 %v1132_v51, %v1119_v49  ;;  %v1146_v53 = vpop.f32.mrf.mxu3 }
 0x177   :  { %v1147_v54 = vadd.f32 %v1146_v53, %v1133_v52  ;;  %v2197_v55 = vpop.eup %2196 }
 0x179   :  { %2198 = vtanh.f32 %v1147_v54 }
 0x17f   :  { %v2199_v56 = vpop.eup %2198 }
 0x180   :  { %v1157_v57 = vpack.c.bf16 %v2199_v56, %v2197_v55 }
 0x182   :  { %1390 = vmatmul.bf16.vlgmr.msra.gmra.mxu2 %v1157_v57 }
 0x1df   :  { %v1363_v58 = vpop.f32.mrf.mxu0 }
 0x1e0   :  { %v1364_v61 = vadd.f32 %v2171_v59, %v1363_v58 }
 0x1e7   :  { %v1365_v1 = vpop.f32.mrf.mxu0 }
 0x1e8   :  { %v1366_v4 = vadd.f32 %v2171_v59, %v1365_v1 }
 0x1ef   :  { %v1377_v60 = vpop.f32.mrf.mxu1 }
 0x1f0   :  { %v1378_v62 = vadd.f32 %v1377_v60, %v1364_v61 }
 0x1f7   :  { %v1379_v3 = vpop.f32.mrf.mxu1 }
 0x1f8   :  { %v1380_v5 = vadd.f32 %v1379_v3, %v1366_v4 }
 0x205   :  { %v1391_v63 = vpop.f32.mrf.mxu2 }
 0x206   :  { %v1392_v0 = vadd.f32 %v1391_v63, %v1378_v62 }
 0x208   :  { %1397 = vst.msk [vmem:[%s2429_s7] sm:$0xff] %vm1396_vm0, %v1392_v0 }
 0x20d   :  { %v1393_v7 = vpop.f32.mrf.mxu2 }
 0x20e   :  { %v1394_v8 = vadd.f32 %v1393_v7, %v1380_v5 }
 0x210   :  { %1398 = vst.msk [vmem:[%s2429_s7 + $0x8] sm:$0xff] %vm1396_vm0, %v1394_v8 }
 0x211   :  { %1403 = vsyncpa [#allocation4], 1 }
 0x212   :  { %1404 = vsyncpa [#allocation6], 1 }

</bundles_post_ra>
